<compile_context>
chip_gen: v7x
topology: tpu7x:2x2x1
jax: 0.10.0
libtpu: 0.0.40
codegen_flags: <defaults>
</compile_context>

<pallas_src>
import math

import jax
import jax.numpy as jnp
from jax.experimental import pallas as pl
from jax.experimental.pallas import tpu as pltpu


def _build_pe_table(max_len: int, d_model: int) -> jnp.ndarray:
    """Deterministic sinusoidal positional-encoding table, shape (max_len, d_model)."""
    position = jnp.arange(0, max_len, dtype=jnp.float32)[:, None]            # (L, 1)
    div_term = jnp.exp(
        jnp.arange(0, d_model, 2, dtype=jnp.float32) * -(math.log(10000.0) / d_model)
    )                                                                         # (D/2,)
    angles = position * div_term                                              # (L, D/2)
    pe = jnp.zeros((max_len, d_model), dtype=jnp.float32)
    pe = pe.at[:, 0::2].set(jnp.sin(angles))
    pe = pe.at[:, 1::2].set(jnp.cos(angles))
    return pe


def _pe_add_kernel(x_ref, pe_ref, o_ref):
    # x_ref / o_ref: (TB, TR, L); pe_ref: (1, TR, L) -> broadcast over batch tile.
    o_ref[...] = (x_ref[...] + pe_ref[...]).astype(o_ref.dtype)


_LANE = 128
_TARGET_TILE_BYTES = 1 << 20  # ~1 MiB per x/out buffer; x2 double-buffer x 3 arrays
                              # ≈ 6 MiB -> under every generation's scoped-VMEM default.


def _row_tile(n_rows: int, row_bytes: int) -> int:
    """Largest multiple-of-8 row count with tile <= ~1 MiB, or the full extent."""
    max_rows = max(8, (_TARGET_TILE_BYTES // max(row_bytes, 1)) // 8 * 8)
    if n_rows <= max_rows:
        return n_rows  # full-extent block dims are always legal
    return max_rows


def positional_encoding(x: jnp.ndarray, pe_table: jnp.ndarray) -> jnp.ndarray:
    """x: (B, S, D). Returns x + pe[:S] (dropout = identity / eval mode)."""
    B, S, D = x.shape
    pe_slice = pe_table[:S, :].astype(x.dtype)  # (S, D), dtype-matched to x
    itemsize = jnp.dtype(x.dtype).itemsize

    if (S * D) % _LANE == 0:
        # Lane-dense path: flatten (S, D) -> (R, 128) so stores are unmasked.
        R, L = (S * D) // _LANE, _LANE
        xs = x.reshape(B, R, L)
        pes = pe_slice.reshape(1, R, L)
    else:
        # Fallback: tile the sequence dim, keep full D last (full-extent lane dim).
        R, L = S, D
        xs = x
        pes = pe_slice[None]  # (1, S, D): no in-body broadcast along rows needed

    row_bytes = L * itemsize
    TR = _row_tile(R, row_bytes)
    if TR >= R:
        # Whole row extent fits in one tile: fold several batch elements per
        # block to reduce grid-step count for small-S*D / large-B shapes.
        TR = R
        TB = int(max(1, min(B, _TARGET_TILE_BYTES // max(R * row_bytes, 1))))
    else:
        TB = 1

    grid = (pl.cdiv(R, TR), pl.cdiv(B, TB))  # row-tile axis outermost -> pe resident
    out = pl.pallas_call(
        _pe_add_kernel,
        out_shape=jax.ShapeDtypeStruct((B, R, L), x.dtype),
        grid_spec=pltpu.PrefetchScalarGridSpec(
            num_scalar_prefetch=0,
            grid=grid,
            in_specs=[
                pl.BlockSpec((TB, TR, L), lambda r, b: (b, r, 0)),
                pl.BlockSpec((1, TR, L), lambda r, b: (0, r, 0)),
            ],
            out_specs=pl.BlockSpec((TB, TR, L), lambda r, b: (b, r, 0)),
        ),
        compiler_params=pltpu.CompilerParams(
            dimension_semantics=("parallel", "parallel")),
    )(xs, pes)
    return out.reshape(B, S, D)


if __name__ == "__main__":
    # Small shapes consistent with the module's forward: (batch, seq, d_model).
    B, S, D = 2, 8, 32
    max_len = 64            # module default is 5000; small deterministic table here
    dropout_p = 0.1         # unused at inference (identity)

    key = jax.random.PRNGKey(0)
    x = jax.random.normal(key, (B, S, D), dtype=jnp.float32)

    pe_table = _build_pe_table(max_len, D)

    out = positional_encoding(x, pe_table)
    out = jax.block_until_ready(out)

    # Reference check in plain JAX.
    ref = x + pe_table[None, :S, :]
    assert out.shape == (B, S, D)
    assert jnp.allclose(out, ref, atol=1e-6), "mismatch vs reference"

    print("KERNEL_OK")
</pallas_src>

<mosaic_0001>
module attributes {stable_mosaic.version = 11 : i64} {
  func.func @_pe_add_kernel(%arg0: i32, %arg1: i32, %arg2: memref<2x2x128xf32, #tpu.memory_space<vmem>>, %arg3: memref<1x2x128xf32, #tpu.memory_space<vmem>>, %arg4: memref<2x2x128xf32, #tpu.memory_space<vmem>>) attributes {dimension_semantics = [#tpu.dimension_semantics<parallel>, #tpu.dimension_semantics<parallel>], iteration_bounds = array<i64: 1, 1>, scalar_prefetch = 0 : i64, scratch_operands = 0 : i64, tpu.core_type = #tpu.core_type<tc>, window_params = [{transform_indices = @transform_0, window_bounds = array<i64: 2, 2, 128>}, {transform_indices = @transform_1, window_bounds = array<i64: 1, 2, 128>}, {transform_indices = @transform_2, window_bounds = array<i64: 2, 2, 128>}]} {
    %c0 = arith.constant 0 : index
    %c0_0 = arith.constant 0 : index
    %c0_1 = arith.constant 0 : index
    %0 = vector.load %arg2[%c0, %c0_0, %c0_1] : memref<2x2x128xf32, #tpu.memory_space<vmem>>, vector<2x2x128xf32>
    %c0_2 = arith.constant 0 : index
    %c0_3 = arith.constant 0 : index
    %c0_4 = arith.constant 0 : index
    %1 = vector.load %arg3[%c0_2, %c0_3, %c0_4] : memref<1x2x128xf32, #tpu.memory_space<vmem>>, vector<1x2x128xf32>
    %2 = vector.broadcast %1 : vector<1x2x128xf32> to vector<2x2x128xf32>
    %3 = arith.addf %0, %2 : vector<2x2x128xf32>
    %c0_5 = arith.constant 0 : index
    %c0_6 = arith.constant 0 : index
    %c0_7 = arith.constant 0 : index
    %4 = vector.load %arg4[%c0_5, %c0_6, %c0_7] : memref<2x2x128xf32, #tpu.memory_space<vmem>>, vector<2x2x128xf32>
    tpu.vector_store %arg4[%c0_5, %c0_6, %c0_7], %3 {strides = array<i32>} : memref<2x2x128xf32, #tpu.memory_space<vmem>>, vector<2x2x128xf32>,
    return
  }
  func.func @transform_0(%arg0: i32, %arg1: i32) -> (i32, i32, i32) {
    %c0_i32 = arith.constant 0 : i32
    %c0_i32_0 = arith.constant 0 : i32
    return %arg1, %arg0, %c0_i32 : i32, i32, i32
  }
  func.func @transform_1(%arg0: i32, %arg1: i32) -> (i32, i32, i32) {
    %c0_i32 = arith.constant 0 : i32
    %c0_i32_0 = arith.constant 0 : i32
    %c0_i32_1 = arith.constant 0 : i32
    return %c0_i32, %arg0, %c0_i32_0 : i32, i32, i32
  }
  func.func @transform_2(%arg0: i32, %arg1: i32) -> (i32, i32, i32) {
    %c0_i32 = arith.constant 0 : i32
    %c0_i32_0 = arith.constant 0 : i32
    return %arg1, %arg0, %c0_i32 : i32, i32, i32
  }
}

</mosaic_0001>

<bundles_post_ra>
// kernel: tpu_custom_call.1
= control target key start
LH: loop header
LB: loop body
LE: loop exit
PB: predicated region body
PF: predicated region fallthrough
CT: control target
= control target key end

     0   :  { %7 = vsyncpa [#allocation3], 0  ;;  %s154_s0 = inlined_call_operand.hbm [shape: f32[2,2,128], index: 0, kind: input, shape index: {}]   ;;  %s155_s1 = inlined_call_operand.vmem [shape: f32[1,2,128], index: 1, kind: input, shape index: {}]   ;;  %s156_s2 = inlined_call_operand.hbm [shape: f32[2,2,128], index: 2, kind: output, shape index: {}]  }
   0x1   :  { %8 = vsyncpa [#allocation4], 0  ;;  %s102_s9 = smov [#allocation2]   ;;  %s54_s13 = scalar_lea.hbm %s154_s0, 64 }
   0x2   :  { %s14_s10 = sshll.u32 %s102_s9, 4  ;;  %p55_p0 = scmp.ne.s32.totalorder %s154_s0, %s54_s13  ;;  %s15_s10 = int_to_ptr.vmem [resolvable:$true] %s14_s10 }
   0x3   :  { %p58_p1 = scmp.lt.u32.totalorder %s54_s13, %s154_s0 }
   0x5   :  { %p60_p2 = pnand %p58_p1, %p55_p0 }
   0x7   :  { %63 = shalt.err (!%p60_p2)
}
   0x8   :  { %s64_s18 = scalar_lea.vmem %s15_s10, 64  ;;  %p69_p4 = scmp.lt.s32.totalorder %s15_s10, %s15_s10 }
   0x9   :  { %p65_p3 = scmp.ne.s32.totalorder %s15_s10, %s64_s18  ;;  %p70_p5 = scmp.lt.s32.totalorder %s64_s18, %s64_s18 }
   0xb   :  { %p71_p6 = por %p70_p5, %p69_p4 }
   0xd   :  { %p72_p7 = pnand %p71_p6, %p65_p3 }
   0xf   :  { %75 = shalt.err (!%p72_p7)
}
  0x10   :  { %s103_s19 = smov 32   ;;  %s104_s20 = smov 2  }
  0x11   :  { %20 = dma.hbm_to_vmem [thread:$0]  %s154_s0, 64, %s15_s10, [#allocation3], %s103_s19, %s103_s19, %s104_s20  }
  0x12   :  { %98 = dma.done.wait [#allocation3], 64  }
  0x13   :  { %99 = vsyncadd [#allocation3], 4294967232  ;;  %s105_s23 = smov [#allocation5]   ;;  %v26_v0 = vld [vmem:[#allocation2] sm:$0x3] }
  0x14   :  { %s38_s24 = sshll.u32 %s105_s23, 4  ;;  %v28_v1 = vld [vmem:[%s155_s1] sm:$0x3]  ;;  %v27_v2 = vld [vmem:[#allocation2 + $0x2] sm:$0x3]  ;;  %s39_s24 = int_to_ptr.vmem [resolvable:$true] %s38_s24 }
  0x15   :  { %v29_v3 = vadd.f32 %v28_v1, %v26_v0  ;;  %v30_v4 = vadd.f32 %v28_v1, %v27_v2  ;;  %s76_s27 = scalar_lea.vmem %s39_s24, 64  ;;  %p81_p9 = scmp.lt.s32.totalorder %s39_s24, %s39_s24 }
  0x16   :  { %p77_p8 = scmp.ne.s32.totalorder %s39_s24, %s76_s27  ;;  %p82_p10 = scmp.lt.s32.totalorder %s76_s27, %s76_s27 }
  0x17   :  { %31 = vst [vmem:[#allocation5] sm:$0x3] %v29_v3  ;;  %32 = vst [vmem:[#allocation5 + $0x2] sm:$0x3] %v30_v4 }
  0x18   :  { %p83_p11 = por %p82_p10, %p81_p9 }
  0x1a   :  { %p84_p12 = pnand %p83_p11, %p77_p8 }
  0x1c   :  { %87 = shalt.err (!%p84_p12)
}
  0x1d   :  { %s88_s29 = scalar_lea.hbm %s156_s2, 64 }
  0x1e   :  { %p89_p13 = scmp.ne.s32.totalorder %s156_s2, %s88_s29  ;;  %p92_p0 = scmp.lt.u32.totalorder %s88_s29, %s156_s2 }
  0x20   :  { %p94_p1 = pnand %p92_p0, %p89_p13 }
  0x22   :  { %97 = shalt.err (!%p94_p1)
}
  0x23   :  { %44 = dma.vmem_to_hbm [thread:$0]  %s39_s24, 64, %s156_s2, [#allocation4], %s103_s19, %s103_s19, %s104_s20  }
  0x24   :  { %100 = dma.done.wait [#allocation4], 64  }
  0x25   :  { %101 = vsyncadd [#allocation4], 4294967232 }
  0x26   :  { %48 = vsyncpa [#allocation3], 1 }
  0x27   :  { %49 = vsyncpa [#allocation4], 1 }

</bundles_post_ra>
